<compile_context>
chip_gen: v5e
topology: v5e:2x2
jax: 0.10.0
libtpu: 0.0.40
codegen_flags: <defaults>
</compile_context>

<pallas_src>
import jax
import jax.numpy as jnp
import numpy as np
from jax.experimental import pallas as pl
from jax.experimental.pallas import tpu as pltpu


# ------------------------------------------------------------------ kernel ---

def _make_kernel(n, latent):
    f32 = jnp.float32
    bf16 = jnp.bfloat16

    def kernel(xin_ref, b1w_ref, b1b_ref, b2w_ref, b2b_ref, g_ref, be_ref,
               b3w_ref, b3b_ref, wl1_ref, bl1_ref, wms_ref, bms_ref, eps_ref,
               z_ref, kl_ref):
        # xin: (8n, 128) f32, row = t*n + sample, lanes = [rows 4t | 4t+1 | 4t+2 | 4t+3]
        xv = xin_ref[...]

        # ---- conv1 (1->8, k3 s2 p1) + ReLU: two row-parity groups, one matmul each
        # even output rows ho1 = 2t need padded rows 4t, 4t+1, 4t+2  -> lanes 0:96
        lhs_e = xv[0:7 * n, 0:96]
        # odd  output rows ho1 = 2t+1 need rows 4t+2, 4t+3, 4t+4
        lhs_o = jnp.concatenate([xv[0:7 * n, 64:96], xv[0:7 * n, 96:128],
                                 xv[n:8 * n, 0:32]], axis=1)
        w1 = b1w_ref[...]
        b1 = b1b_ref[...]
        c1e = jnp.maximum(jnp.dot(lhs_e.astype(bf16), w1,
                                  preferred_element_type=f32) + b1, 0.0)   # (7n,112)
        c1o = jnp.maximum(jnp.dot(lhs_o.astype(bf16), w1,
                                  preferred_element_type=f32) + b1, 0.0)   # (7n,112)
        # c1e rows: ho1 = 0,2,..,12 ; c1o rows: ho1 = 1,3,..,13 (sample-minor)

        # ---- conv2 (8->16, k3 s2 p1): one matmul over all 7 output rows --------
        z8 = jnp.zeros((7 * n, 8), f32)
        p1e = jnp.concatenate([z8, c1e, z8], axis=1)   # padded-col rows 1,3,..,13
        p1o = jnp.concatenate([z8, c1o, z8], axis=1)   # padded-col rows 2,4,..,14
        blk0 = jnp.concatenate([jnp.zeros((n, 128), f32), p1o[0:6 * n]], axis=0)
        lhs2 = jnp.concatenate([blk0, p1e, p1o], axis=1).astype(bf16)      # (7n,384)
        pre2 = jnp.dot(lhs2, b2w_ref[...],
                       preferred_element_type=f32) + b2b_ref[...]          # (7n,112)

        # ---- BatchNorm2d(16) (training-mode batch stats, eps=1e-5) + ReLU ------
        cnt = 49.0 * n

        def chan_sum(v):   # (1,112) -> (1,16): sum the 7 width groups per channel
            return (v[:, 0:16] + v[:, 16:32] + v[:, 32:48] + v[:, 48:64]
                    + v[:, 64:80] + v[:, 80:96] + v[:, 96:112])

        mean = chan_sum(jnp.sum(pre2, axis=0, keepdims=True)) * (1.0 / cnt)
        mean_t = jnp.concatenate([mean] * 7, axis=1)
        cen = pre2 - mean_t
        var = chan_sum(jnp.sum(cen * cen, axis=0, keepdims=True)) * (1.0 / cnt)
        inv_t = jnp.concatenate([jax.lax.rsqrt(var + 1e-5)] * 7, axis=1)
        a2 = jnp.maximum(cen * inv_t * g_ref[...] + be_ref[...], 0.0)      # (7n,112)

        # ---- conv3 (16->32, k3 s2 p0) + ReLU: one matmul for all 3 output rows --
        rows3 = [jnp.concatenate([a2[(2 * h) * n:(2 * h + 1) * n],
                                  a2[(2 * h + 1) * n:(2 * h + 2) * n],
                                  a2[(2 * h + 2) * n:(2 * h + 3) * n]], axis=1)
                 for h in range(3)]
        lhs3 = jnp.concatenate(rows3, axis=0).astype(bf16)                 # (3n,336)
        c3 = jnp.maximum(jnp.dot(lhs3, b3w_ref[...],
                                 preferred_element_type=f32) + b3b_ref[...], 0.0)

        # ---- flatten + linear1 (single (n,288)x(288,128) matmul) + ReLU ---------
        flat = jnp.concatenate([c3[0:n], c3[n:2 * n], c3[2 * n:3 * n]],
                               axis=1).astype(bf16)                        # (n,288)
        h = jnp.maximum(jnp.dot(flat, wl1_ref[...],
                                preferred_element_type=f32) + bl1_ref[...], 0.0)

        # ---- fused mu / log-sigma heads, reparameterized sample, KL -------------
        y = jnp.dot(h.astype(bf16), wms_ref[...],
                    preferred_element_type=f32) + bms_ref[...]             # (n,2L)
        mu = y[:, 0:latent]
        logsig = y[:, latent:2 * latent]
        sigma = jnp.exp(logsig)
        z_ref[...] = mu + sigma * eps_ref[...]
        # kl = sum(sigma^2 + mu^2 - log(sigma) - 1/2); log(sigma) == logsig exactly.
        kl_ref[...] = jnp.sum(sigma * sigma + mu * mu - logsig - 0.5).reshape(1, 1)

    return kernel


# ----------------------------------------------------------------- wrapper ---

def _vmem():
    return pl.BlockSpec(memory_space=pltpu.MemorySpace.VMEM)


def _prep_input(x):
    """(n,1,28,28) -> (8n,128): rows split mod 4, row = t*n + sample,
    lanes = [padded row 4t | 4t+1 | 4t+2 | 4t+3], 32 lanes each (30 real cols)."""
    n = x.shape[0]
    xpad = jnp.zeros((n, 32, 32), jnp.float32).at[:, 1:29, 1:29].set(x[:, 0])
    planes = [xpad[:, p::4, :] for p in range(4)]            # each (n, 8, 32)
    xin = jnp.concatenate(planes, axis=-1)                   # (n, 8, 128)
    return jnp.transpose(xin, (1, 0, 2)).reshape(8 * n, 128)


def variational_encoder_forward(x, kp, eps):
    n = x.shape[0]
    latent = eps.shape[1]
    xin = _prep_input(x)

    z, kl = pl.pallas_call(
        _make_kernel(n, latent),
        out_shape=(jax.ShapeDtypeStruct((n, latent), jnp.float32),
                   jax.ShapeDtypeStruct((1, 1), jnp.float32)),
        in_specs=[_vmem()] * 14,
        out_specs=(_vmem(), _vmem()),
        compiler_params=pltpu.CompilerParams(vmem_limit_bytes=32 * 1024 * 1024),
    )(xin, kp["B1"], kp["b1t"], kp["B2"], kp["b2t"], kp["gt"], kp["bt"],
      kp["B3"], kp["b3t"], kp["Wl1"], kp["bl1"], kp["wms"], kp["bms"], eps)
    return z, kl[0, 0]


# ---------------------------------------------- host-side weight re-layout ---

def _banded_conv_weight(w, win_lanes, wout):
    """Fold kj taps + column stride/padding of a 3x3 stride-2 conv into a dense
    matrix:  B[(ki*win_lanes + win)*Ci + ci, wo*Co + co] = W[co,ci,ki,kj],
    win = 2*wo + kj.  One matmul per layer replaces per-row im2col."""
    w = np.asarray(w, np.float32)
    co_n, ci_n = w.shape[0], w.shape[1]
    B = np.zeros((3 * win_lanes * ci_n, wout * co_n), np.float32)
    for ki in range(3):
        for kj in range(3):
            for wo in range(wout):
                wi = 2 * wo + kj
                r0 = ki * win_lanes * ci_n + wi * ci_n
                B[r0:r0 + ci_n, wo * co_n:(wo + 1) * co_n] = w[:, :, ki, kj].T
    return B


def prepare_params(p):
    """One-time conversion from PyTorch layouts to the kernel's layouts."""
    mx = jnp.bfloat16   # MXU operand dtype (accumulation stays f32 in-kernel)

    def tile(v, r):
        return jnp.asarray(np.tile(np.asarray(v, np.float32), r).reshape(1, -1))

    # linear1: torch flatten order is (c, h, w); kernel lane order is (h, w, c).
    wl1p = np.asarray(p["wl1"], np.float32).reshape(128, 32, 3, 3)
    wl1p = np.transpose(wl1p, (2, 3, 1, 0)).reshape(288, 128)

    return dict(
        B1=jnp.asarray(_banded_conv_weight(p["w1"], 32, 14), mx), b1t=tile(p["b1"], 14),
        B2=jnp.asarray(_banded_conv_weight(p["w2"], 16, 7), mx),  b2t=tile(p["b2"], 7),
        gt=tile(p["gamma"], 7), bt=tile(p["beta"], 7),
        B3=jnp.asarray(_banded_conv_weight(p["w3"], 7, 3), mx),   b3t=tile(p["b3"], 3),
        Wl1=jnp.asarray(wl1p, mx),
        bl1=jnp.asarray(np.asarray(p["bl1"], np.float32).reshape(1, -1)),
        wms=jnp.asarray(np.concatenate([np.asarray(p["wl2"], np.float32).T,
                                        np.asarray(p["wl3"], np.float32).T], 1), mx),
        bms=jnp.asarray(np.concatenate([np.asarray(p["bl2"], np.float32),
                                        np.asarray(p["bl3"], np.float32)]).reshape(1, -1)))


# ------------------------------------------------- pure-JAX reference check ---

def reference_forward(x, p, eps):
    hp = jax.lax.Precision.HIGHEST

    def conv(v, w, b, stride, pad):
        dn = jax.lax.conv_dimension_numbers(v.shape, w.shape, ("NCHW", "OIHW", "NCHW"))
        y = jax.lax.conv_general_dilated(v, w, (stride, stride),
                                         ((pad, pad), (pad, pad)),
                                         dimension_numbers=dn, precision=hp)
        return y + b[None, :, None, None]

    c1 = jnp.maximum(conv(x, p["w1"], p["b1"], 2, 1), 0.0)
    c2 = conv(c1, p["w2"], p["b2"], 2, 1)
    mean = jnp.mean(c2, axis=(0, 2, 3), keepdims=True)
    var = jnp.mean((c2 - mean) ** 2, axis=(0, 2, 3), keepdims=True)
    c2 = (c2 - mean) * jax.lax.rsqrt(var + 1e-5)
    c2 = jnp.maximum(c2 * p["gamma"][None, :, None, None]
                     + p["beta"][None, :, None, None], 0.0)
    c3 = jnp.maximum(conv(c2, p["w3"], p["b3"], 2, 0), 0.0)
    flat = c3.reshape(c3.shape[0], -1)                               # (c, h, w) order
    h = jnp.maximum(jnp.dot(flat, p["wl1"].T, precision=hp) + p["bl1"], 0.0)
    mu = jnp.dot(h, p["wl2"].T, precision=hp) + p["bl2"]
    logsig = jnp.dot(h, p["wl3"].T, precision=hp) + p["bl3"]
    sigma = jnp.exp(logsig)
    z = mu + sigma * eps
    kl = jnp.sum(sigma ** 2 + mu ** 2 - logsig - 0.5)
    return z, kl


# --------------------------------------------------------------------- main ---

if __name__ == "__main__":
    latent_dims = 8
    batch = 2

    key = jax.random.PRNGKey(0)
    keys = jax.random.split(key, 16)

    def init(k, shape, fan_in):
        bound = 1.0 / float(fan_in) ** 0.5
        return jax.random.uniform(k, shape, jnp.float32, -bound, bound)

    # Parameters in native PyTorch layouts (converted once by prepare_params).
    torch_params = dict(
        w1=init(keys[1], (8, 1, 3, 3), 9),      b1=init(keys[2], (8,), 9),
        w2=init(keys[3], (16, 8, 3, 3), 72),    b2=init(keys[4], (16,), 72),
        w3=init(keys[5], (32, 16, 3, 3), 144),  b3=init(keys[6], (32,), 144),
        wl1=init(keys[7], (128, 288), 288),     bl1=init(keys[8], (128,), 288),
        wl2=init(keys[9], (latent_dims, 128), 128),
        bl2=init(keys[10], (latent_dims,), 128),
        wl3=init(keys[11], (latent_dims, 128), 128),
        bl3=init(keys[12], (latent_dims,), 128),
        gamma=jnp.ones((16,), jnp.float32), beta=jnp.zeros((16,), jnp.float32))

    kparams = prepare_params(torch_params)

    x = jax.random.normal(keys[0], (batch, 1, 28, 28), jnp.float32)
    # standard-normal noise standing in for torch.distributions.Normal(0,1).sample
    eps = jax.random.normal(keys[13], (batch, latent_dims), jnp.float32)

    fwd = jax.jit(variational_encoder_forward)
    z, kl = fwd(x, kparams, eps)
    jax.block_until_ready((z, kl))

    assert z.shape == (batch, latent_dims) and kl.shape == ()

    # structural-correctness check against a pure-JAX reference of the module
    z_ref, kl_ref = reference_forward(x, torch_params, eps)
    assert np.allclose(np.asarray(z), np.asarray(z_ref), atol=5e-2, rtol=5e-2)
    assert np.allclose(float(kl), float(kl_ref), atol=5e-2, rtol=5e-2)

    print("KERNEL_OK")
</pallas_src>

<mosaic_0001>
module attributes {stable_mosaic.version = 11 : i64} {
  func.func @kernel(%arg0: memref<16x128xf32, #tpu.memory_space<vmem>>, %arg1: memref<96x112xbf16, #tpu.memory_space<vmem>>, %arg2: memref<1x112xf32, #tpu.memory_space<vmem>>, %arg3: memref<384x112xbf16, #tpu.memory_space<vmem>>, %arg4: memref<1x112xf32, #tpu.memory_space<vmem>>, %arg5: memref<1x112xf32, #tpu.memory_space<vmem>>, %arg6: memref<1x112xf32, #tpu.memory_space<vmem>>, %arg7: memref<336x96xbf16, #tpu.memory_space<vmem>>, %arg8: memref<1x96xf32, #tpu.memory_space<vmem>>, %arg9: memref<288x128xbf16, #tpu.memory_space<vmem>>, %arg10: memref<1x128xf32, #tpu.memory_space<vmem>>, %arg11: memref<128x16xbf16, #tpu.memory_space<vmem>>, %arg12: memref<1x16xf32, #tpu.memory_space<vmem>>, %arg13: memref<2x8xf32, #tpu.memory_space<vmem>>, %arg14: memref<2x8xf32, #tpu.memory_space<vmem>>, %arg15: memref<1x1xf32, #tpu.memory_space<vmem>>) attributes {dimension_semantics = [], scalar_prefetch = 0 : i64, scratch_operands = 0 : i64, tpu.core_type = #tpu.core_type<tc>} {
    %c0 = arith.constant 0 : index
    %c0_0 = arith.constant 0 : index
    %0 = vector.load %arg0[%c0, %c0_0] : memref<16x128xf32, #tpu.memory_space<vmem>>, vector<16x128xf32>
    %1 = vector.extract_strided_slice %0 {offsets = [0, 0], sizes = [14, 96], strides = [1, 1]} : vector<16x128xf32> to vector<14x96xf32>
    %2 = vector.extract_strided_slice %0 {offsets = [0, 64], sizes = [14, 32], strides = [1, 1]} : vector<16x128xf32> to vector<14x32xf32>
    %3 = vector.extract_strided_slice %0 {offsets = [0, 96], sizes = [14, 32], strides = [1, 1]} : vector<16x128xf32> to vector<14x32xf32>
    %4 = vector.extract_strided_slice %0 {offsets = [2, 0], sizes = [14, 32], strides = [1, 1]} : vector<16x128xf32> to vector<14x32xf32>
    %5 = tpu.concatenate %2, %3, %4 in 1 : vector<14x32xf32>, vector<14x32xf32>, vector<14x32xf32> -> vector<14x96xf32>
    %c0_1 = arith.constant 0 : index
    %c0_2 = arith.constant 0 : index
    %6 = vector.load %arg1[%c0_1, %c0_2] : memref<96x112xbf16, #tpu.memory_space<vmem>>, vector<96x112xbf16>
    %c0_3 = arith.constant 0 : index
    %c0_4 = arith.constant 0 : index
    %7 = vector.load %arg2[%c0_3, %c0_4] : memref<1x112xf32, #tpu.memory_space<vmem>>, vector<1x112xf32>
    %8 = arith.truncf %1 : vector<14x96xf32> to vector<14x96xbf16>
    %cst = arith.constant dense<0.000000e+00> : vector<14x112xf32>
    %9 = tpu.matmul %8, %6, %cst {dimension_numbers = #tpu.dot_dimension_numbers<[1], [0], [0], [1], [0, 0, 1, 1], [], []>} : vector<14x96xbf16>, vector<96x112xbf16>, vector<14x112xf32> -> vector<14x112xf32>
    %10 = vector.broadcast %7 : vector<1x112xf32> to vector<14x112xf32>
    %11 = arith.addf %9, %10 : vector<14x112xf32>
    %cst_5 = arith.constant 0.000000e+00 : f32
    %12 = vector.broadcast %cst_5 : f32 to vector<14x112xf32>
    %13 = arith.maximumf %11, %12 : vector<14x112xf32>
    %14 = arith.truncf %5 : vector<14x96xf32> to vector<14x96xbf16>
    %cst_6 = arith.constant dense<0.000000e+00> : vector<14x112xf32>
    %15 = tpu.matmul %14, %6, %cst_6 {dimension_numbers = #tpu.dot_dimension_numbers<[1], [0], [0], [1], [0, 0, 1, 1], [], []>} : vector<14x96xbf16>, vector<96x112xbf16>, vector<14x112xf32> -> vector<14x112xf32>
    %16 = vector.broadcast %7 : vector<1x112xf32> to vector<14x112xf32>
    %17 = arith.addf %15, %16 : vector<14x112xf32>
    %cst_7 = arith.constant 0.000000e+00 : f32
    %18 = vector.broadcast %cst_7 : f32 to vector<14x112xf32>
    %19 = arith.maximumf %17, %18 : vector<14x112xf32>
    %cst_8 = arith.constant 0.000000e+00 : f32
    %20 = vector.broadcast %cst_8 : f32 to vector<14x8xf32>
    %21 = tpu.concatenate %20, %13, %20 in 1 : vector<14x8xf32>, vector<14x112xf32>, vector<14x8xf32> -> vector<14x128xf32>
    %22 = tpu.concatenate %20, %19, %20 in 1 : vector<14x8xf32>, vector<14x112xf32>, vector<14x8xf32> -> vector<14x128xf32>
    %cst_9 = arith.constant 0.000000e+00 : f32
    %23 = vector.broadcast %cst_9 : f32 to vector<2x128xf32>
    %24 = vector.extract_strided_slice %22 {offsets = [0, 0], sizes = [12, 128], strides = [1, 1]} : vector<14x128xf32> to vector<12x128xf32>
    %25 = tpu.concatenate %23, %24 in 0 : vector<2x128xf32>, vector<12x128xf32> -> vector<14x128xf32>
    %26 = tpu.concatenate %25, %21, %22 in 1 : vector<14x128xf32>, vector<14x128xf32>, vector<14x128xf32> -> vector<14x384xf32>
    %27 = arith.truncf %26 : vector<14x384xf32> to vector<14x384xbf16>
    %c0_10 = arith.constant 0 : index
    %c0_11 = arith.constant 0 : index
    %28 = vector.load %arg3[%c0_10, %c0_11] : memref<384x112xbf16, #tpu.memory_space<vmem>>, vector<384x112xbf16>
    %cst_12 = arith.constant dense<0.000000e+00> : vector<14x112xf32>
    %29 = tpu.matmul %27, %28, %cst_12 {dimension_numbers = #tpu.dot_dimension_numbers<[1], [0], [0], [1], [0, 0, 1, 1], [], []>} : vector<14x384xbf16>, vector<384x112xbf16>, vector<14x112xf32> -> vector<14x112xf32>
    %c0_13 = arith.constant 0 : index
    %c0_14 = arith.constant 0 : index
    %30 = vector.load %arg4[%c0_13, %c0_14] : memref<1x112xf32, #tpu.memory_space<vmem>>, vector<1x112xf32>
    %31 = vector.broadcast %30 : vector<1x112xf32> to vector<14x112xf32>
    %32 = arith.addf %29, %31 : vector<14x112xf32>
    %cst_15 = arith.constant dense<0.000000e+00> : vector<112xf32>
    %33 = vector.multi_reduction <add>, %32, %cst_15 [0] : vector<14x112xf32> to vector<112xf32>
    %34 = vector.shape_cast %33 : vector<112xf32> to vector<1x112xf32>
    %35 = vector.extract_strided_slice %34 {offsets = [0, 0], sizes = [1, 16], strides = [1, 1]} : vector<1x112xf32> to vector<1x16xf32>
    %36 = vector.extract_strided_slice %34 {offsets = [0, 16], sizes = [1, 16], strides = [1, 1]} : vector<1x112xf32> to vector<1x16xf32>
    %37 = arith.addf %35, %36 : vector<1x16xf32>
    %38 = vector.extract_strided_slice %34 {offsets = [0, 32], sizes = [1, 16], strides = [1, 1]} : vector<1x112xf32> to vector<1x16xf32>
    %39 = arith.addf %37, %38 : vector<1x16xf32>
    %40 = vector.extract_strided_slice %34 {offsets = [0, 48], sizes = [1, 16], strides = [1, 1]} : vector<1x112xf32> to vector<1x16xf32>
    %41 = arith.addf %39, %40 : vector<1x16xf32>
    %42 = vector.extract_strided_slice %34 {offsets = [0, 64], sizes = [1, 16], strides = [1, 1]} : vector<1x112xf32> to vector<1x16xf32>
    %43 = arith.addf %41, %42 : vector<1x16xf32>
    %44 = vector.extract_strided_slice %34 {offsets = [0, 80], sizes = [1, 16], strides = [1, 1]} : vector<1x112xf32> to vector<1x16xf32>
    %45 = arith.addf %43, %44 : vector<1x16xf32>
    %46 = vector.extract_strided_slice %34 {offsets = [0, 96], sizes = [1, 16], strides = [1, 1]} : vector<1x112xf32> to vector<1x16xf32>
    %47 = arith.addf %45, %46 : vector<1x16xf32>
    %cst_16 = arith.constant 0.0102040814 : f32
    %48 = vector.broadcast %cst_16 : f32 to vector<1x16xf32>
    %49 = arith.mulf %47, %48 : vector<1x16xf32>
    %50 = tpu.concatenate %49, %49, %49, %49, %49, %49, %49 in 1 : vector<1x16xf32>, vector<1x16xf32>, vector<1x16xf32>, vector<1x16xf32>, vector<1x16xf32>, vector<1x16xf32>, vector<1x16xf32> -> vector<1x112xf32>
    %51 = vector.broadcast %50 : vector<1x112xf32> to vector<14x112xf32>
    %52 = arith.subf %32, %51 : vector<14x112xf32>
    %53 = arith.mulf %52, %52 : vector<14x112xf32>
    %cst_17 = arith.constant dense<0.000000e+00> : vector<112xf32>
    %54 = vector.multi_reduction <add>, %53, %cst_17 [0] : vector<14x112xf32> to vector<112xf32>
    %55 = vector.shape_cast %54 : vector<112xf32> to vector<1x112xf32>
    %56 = vector.extract_strided_slice %55 {offsets = [0, 0], sizes = [1, 16], strides = [1, 1]} : vector<1x112xf32> to vector<1x16xf32>
    %57 = vector.extract_strided_slice %55 {offsets = [0, 16], sizes = [1, 16], strides = [1, 1]} : vector<1x112xf32> to vector<1x16xf32>
    %58 = arith.addf %56, %57 : vector<1x16xf32>
    %59 = vector.extract_strided_slice %55 {offsets = [0, 32], sizes = [1, 16], strides = [1, 1]} : vector<1x112xf32> to vector<1x16xf32>
    %60 = arith.addf %58, %59 : vector<1x16xf32>
    %61 = vector.extract_strided_slice %55 {offsets = [0, 48], sizes = [1, 16], strides = [1, 1]} : vector<1x112xf32> to vector<1x16xf32>
    %62 = arith.addf %60, %61 : vector<1x16xf32>
    %63 = vector.extract_strided_slice %55 {offsets = [0, 64], sizes = [1, 16], strides = [1, 1]} : vector<1x112xf32> to vector<1x16xf32>
    %64 = arith.addf %62, %63 : vector<1x16xf32>
    %65 = vector.extract_strided_slice %55 {offsets = [0, 80], sizes = [1, 16], strides = [1, 1]} : vector<1x112xf32> to vector<1x16xf32>
    %66 = arith.addf %64, %65 : vector<1x16xf32>
    %67 = vector.extract_strided_slice %55 {offsets = [0, 96], sizes = [1, 16], strides = [1, 1]} : vector<1x112xf32> to vector<1x16xf32>
    %68 = arith.addf %66, %67 : vector<1x16xf32>
    %cst_18 = arith.constant 0.0102040814 : f32
    %69 = vector.broadcast %cst_18 : f32 to vector<1x16xf32>
    %70 = arith.mulf %68, %69 : vector<1x16xf32>
    %cst_19 = arith.constant 9.99999974E-6 : f32
    %71 = vector.broadcast %cst_19 : f32 to vector<1x16xf32>
    %72 = arith.addf %70, %71 : vector<1x16xf32>
    %73 = math.rsqrt %72 : vector<1x16xf32>
    %74 = tpu.concatenate %73, %73, %73, %73, %73, %73, %73 in 1 : vector<1x16xf32>, vector<1x16xf32>, vector<1x16xf32>, vector<1x16xf32>, vector<1x16xf32>, vector<1x16xf32>, vector<1x16xf32> -> vector<1x112xf32>
    %75 = vector.broadcast %74 : vector<1x112xf32> to vector<14x112xf32>
    %76 = arith.mulf %52, %75 : vector<14x112xf32>
    %c0_20 = arith.constant 0 : index
    %c0_21 = arith.constant 0 : index
    %77 = vector.load %arg5[%c0_20, %c0_21] : memref<1x112xf32, #tpu.memory_space<vmem>>, vector<1x112xf32>
    %78 = vector.broadcast %77 : vector<1x112xf32> to vector<14x112xf32>
    %79 = arith.mulf %76, %78 : vector<14x112xf32>
    %c0_22 = arith.constant 0 : index
    %c0_23 = arith.constant 0 : index
    %80 = vector.load %arg6[%c0_22, %c0_23] : memref<1x112xf32, #tpu.memory_space<vmem>>, vector<1x112xf32>
    %81 = vector.broadcast %80 : vector<1x112xf32> to vector<14x112xf32>
    %82 = arith.addf %79, %81 : vector<14x112xf32>
    %cst_24 = arith.constant 0.000000e+00 : f32
    %83 = vector.broadcast %cst_24 : f32 to vector<14x112xf32>
    %84 = arith.maximumf %82, %83 : vector<14x112xf32>
    %85 = vector.extract_strided_slice %84 {offsets = [0, 0], sizes = [2, 112], strides = [1, 1]} : vector<14x112xf32> to vector<2x112xf32>
    %86 = vector.extract_strided_slice %84 {offsets = [2, 0], sizes = [2, 112], strides = [1, 1]} : vector<14x112xf32> to vector<2x112xf32>
    %87 = vector.extract_strided_slice %84 {offsets = [4, 0], sizes = [2, 112], strides = [1, 1]} : vector<14x112xf32> to vector<2x112xf32>
    %88 = tpu.concatenate %85, %86, %87 in 1 : vector<2x112xf32>, vector<2x112xf32>, vector<2x112xf32> -> vector<2x336xf32>
    %89 = vector.extract_strided_slice %84 {offsets = [4, 0], sizes = [2, 112], strides = [1, 1]} : vector<14x112xf32> to vector<2x112xf32>
    %90 = vector.extract_strided_slice %84 {offsets = [6, 0], sizes = [2, 112], strides = [1, 1]} : vector<14x112xf32> to vector<2x112xf32>
    %91 = vector.extract_strided_slice %84 {offsets = [8, 0], sizes = [2, 112], strides = [1, 1]} : vector<14x112xf32> to vector<2x112xf32>
    %92 = tpu.concatenate %89, %90, %91 in 1 : vector<2x112xf32>, vector<2x112xf32>, vector<2x112xf32> -> vector<2x336xf32>
    %93 = vector.extract_strided_slice %84 {offsets = [8, 0], sizes = [2, 112], strides = [1, 1]} : vector<14x112xf32> to vector<2x112xf32>
    %94 = vector.extract_strided_slice %84 {offsets = [10, 0], sizes = [2, 112], strides = [1, 1]} : vector<14x112xf32> to vector<2x112xf32>
    %95 = vector.extract_strided_slice %84 {offsets = [12, 0], sizes = [2, 112], strides = [1, 1]} : vector<14x112xf32> to vector<2x112xf32>
    %96 = tpu.concatenate %93, %94, %95 in 1 : vector<2x112xf32>, vector<2x112xf32>, vector<2x112xf32> -> vector<2x336xf32>
    %97 = tpu.concatenate %88, %92, %96 in 0 : vector<2x336xf32>, vector<2x336xf32>, vector<2x336xf32> -> vector<6x336xf32>
    %98 = arith.truncf %97 : vector<6x336xf32> to vector<6x336xbf16>
    %c0_25 = arith.constant 0 : index
    %c0_26 = arith.constant 0 : index
    %99 = vector.load %arg7[%c0_25, %c0_26] : memref<336x96xbf16, #tpu.memory_space<vmem>>, vector<336x96xbf16>
    %cst_27 = arith.constant dense<0.000000e+00> : vector<6x96xf32>
    %100 = tpu.matmul %98, %99, %cst_27 {dimension_numbers = #tpu.dot_dimension_numbers<[1], [0], [0], [1], [0, 0, 1, 1], [], []>} : vector<6x336xbf16>, vector<336x96xbf16>, vector<6x96xf32> -> vector<6x96xf32>
    %c0_28 = arith.constant 0 : index
    %c0_29 = arith.constant 0 : index
    %101 = vector.load %arg8[%c0_28, %c0_29] : memref<1x96xf32, #tpu.memory_space<vmem>>, vector<1x96xf32>
    %102 = vector.broadcast %101 : vector<1x96xf32> to vector<6x96xf32>
    %103 = arith.addf %100, %102 : vector<6x96xf32>
    %cst_30 = arith.constant 0.000000e+00 : f32
    %104 = vector.broadcast %cst_30 : f32 to vector<6x96xf32>
    %105 = arith.maximumf %103, %104 : vector<6x96xf32>
    %106 = vector.extract_strided_slice %105 {offsets = [0, 0], sizes = [2, 96], strides = [1, 1]} : vector<6x96xf32> to vector<2x96xf32>
    %107 = vector.extract_strided_slice %105 {offsets = [2, 0], sizes = [2, 96], strides = [1, 1]} : vector<6x96xf32> to vector<2x96xf32>
    %108 = vector.extract_strided_slice %105 {offsets = [4, 0], sizes = [2, 96], strides = [1, 1]} : vector<6x96xf32> to vector<2x96xf32>
    %109 = tpu.concatenate %106, %107, %108 in 1 : vector<2x96xf32>, vector<2x96xf32>, vector<2x96xf32> -> vector<2x288xf32>
    %110 = arith.truncf %109 : vector<2x288xf32> to vector<2x288xbf16>
    %c0_31 = arith.constant 0 : index
    %c0_32 = arith.constant 0 : index
    %111 = vector.load %arg9[%c0_31, %c0_32] : memref<288x128xbf16, #tpu.memory_space<vmem>>, vector<288x128xbf16>
    %cst_33 = arith.constant dense<0.000000e+00> : vector<2x128xf32>
    %112 = tpu.matmul %110, %111, %cst_33 {dimension_numbers = #tpu.dot_dimension_numbers<[1], [0], [0], [1], [0, 0, 1, 1], [], []>} : vector<2x288xbf16>, vector<288x128xbf16>, vector<2x128xf32> -> vector<2x128xf32>
    %c0_34 = arith.constant 0 : index
    %c0_35 = arith.constant 0 : index
    %113 = vector.load %arg10[%c0_34, %c0_35] : memref<1x128xf32, #tpu.memory_space<vmem>>, vector<1x128xf32>
    %114 = vector.broadcast %113 : vector<1x128xf32> to vector<2x128xf32>
    %115 = arith.addf %112, %114 : vector<2x128xf32>
    %cst_36 = arith.constant 0.000000e+00 : f32
    %116 = vector.broadcast %cst_36 : f32 to vector<2x128xf32>
    %117 = arith.maximumf %115, %116 : vector<2x128xf32>
    %118 = arith.truncf %117 : vector<2x128xf32> to vector<2x128xbf16>
    %c0_37 = arith.constant 0 : index
    %c0_38 = arith.constant 0 : index
    %119 = vector.load %arg11[%c0_37, %c0_38] : memref<128x16xbf16, #tpu.memory_space<vmem>>, vector<128x16xbf16>
    %cst_39 = arith.constant dense<0.000000e+00> : vector<2x16xf32>
    %120 = tpu.matmul %118, %119, %cst_39 {dimension_numbers = #tpu.dot_dimension_numbers<[1], [0], [0], [1], [0, 0, 1, 1], [], []>} : vector<2x128xbf16>, vector<128x16xbf16>, vector<2x16xf32> -> vector<2x16xf32>
    %c0_40 = arith.constant 0 : index
    %c0_41 = arith.constant 0 : index
    %121 = vector.load %arg12[%c0_40, %c0_41] : memref<1x16xf32, #tpu.memory_space<vmem>>, vector<1x16xf32>
    %122 = vector.broadcast %121 : vector<1x16xf32> to vector<2x16xf32>
    %123 = arith.addf %120, %122 : vector<2x16xf32>
    %124 = vector.extract_strided_slice %123 {offsets = [0, 0], sizes = [2, 8], strides = [1, 1]} : vector<2x16xf32> to vector<2x8xf32>
    %125 = vector.extract_strided_slice %123 {offsets = [0, 8], sizes = [2, 8], strides = [1, 1]} : vector<2x16xf32> to vector<2x8xf32>
    %126 = math.exp %125 : vector<2x8xf32>
    %c0_42 = arith.constant 0 : index
    %c0_43 = arith.constant 0 : index
    %127 = vector.load %arg13[%c0_42, %c0_43] : memref<2x8xf32, #tpu.memory_space<vmem>>, vector<2x8xf32>
    %128 = arith.mulf %126, %127 : vector<2x8xf32>
    %129 = arith.addf %124, %128 : vector<2x8xf32>
    %c0_44 = arith.constant 0 : index
    %c0_45 = arith.constant 0 : index
    %130 = vector.load %arg14[%c0_44, %c0_45] : memref<2x8xf32, #tpu.memory_space<vmem>>, vector<2x8xf32>
    tpu.vector_store %arg14[%c0_44, %c0_45], %129 {strides = array<i32>} : memref<2x8xf32, #tpu.memory_space<vmem>>, vector<2x8xf32>,
    %131 = arith.mulf %126, %126 : vector<2x8xf32>
    %132 = arith.mulf %124, %124 : vector<2x8xf32>
    %133 = arith.addf %131, %132 : vector<2x8xf32>
    %134 = arith.subf %133, %125 : vector<2x8xf32>
    %cst_46 = arith.constant 5.000000e-01 : f32
    %135 = vector.broadcast %cst_46 : f32 to vector<2x8xf32>
    %136 = arith.subf %134, %135 : vector<2x8xf32>
    %137 = vector.shape_cast %136 : vector<2x8xf32> to vector<1x2x8xf32>
    %cst_47 = arith.constant dense<0.000000e+00> : vector<1xf32>
    %138 = vector.multi_reduction <add>, %137, %cst_47 [1, 2] : vector<1x2x8xf32> to vector<1xf32>
    %139 = vector.shape_cast %138 : vector<1xf32> to vector<1x1x1xf32>
    %140 = vector.extract %139[0, 0, 0] : f32 from vector<1x1x1xf32>
    %141 = vector.broadcast %140 : f32 to vector<1x1xf32>
    %c0_48 = arith.constant 0 : index
    %c0_49 = arith.constant 0 : index
    %142 = vector.load %arg15[%c0_48, %c0_49] : memref<1x1xf32, #tpu.memory_space<vmem>>, vector<1x1xf32>
    tpu.vector_store %arg15[%c0_48, %c0_49], %141 {strides = array<i32>} : memref<1x1xf32, #tpu.memory_space<vmem>>, vector<1x1xf32>,
    return
  }
}

</mosaic_0001>

<bundles_post_ra>
// kernel: variational_encoder_forward.1
= control target key start
LH: loop header
LB: loop body
LE: loop exit
PB: predicated region body
PF: predicated region fallthrough
CT: control target
= control target key end

     0   :  { %21 = vsyncpa [#allocation3], 0  ;;  %vm62_vm0 = vcmask 1045504   ;;  %s1734_s26 = smov 64   ;;  %s2190_s0 = inlined_call_operand.vmem [shape: f32[16,128], index: 0, kind: input, shape index: {}]   ;;  %s2191_s1 = inlined_call_operand.vmem [shape: bf16[96,112], index: 1, kind: input, shape index: {}]   ;;  %s2192_s2 = inlined_call_operand.vmem [shape: f32[1,112], index: 2, kind: input, shape index: {}]   ;;  %s2193_s3 = inlined_call_operand.vmem [shape: bf16[384,112], index: 3, kind: input, shape index: {}]   ;;  %s2194_s4 = inlined_call_operand.vmem [shape: f32[1,112], index: 4, kind: input, shape index: {}]   ;;  %s2195_s5 = inlined_call_operand.vmem [shape: f32[1,112], index: 5, kind: input, shape index: {}]   ;;  %s2196_s6 = inlined_call_operand.vmem [shape: f32[1,112], index: 6, kind: input, shape index: {}]   ;;  %s2197_s7 = inlined_call_operand.vmem [shape: bf16[336,96], index: 7, kind: input, shape index: {}]   ;;  %s2198_s8 = inlined_call_operand.vmem [shape: f32[1,96], index: 8, kind: input, shape index: {}]   ;;  %s2199_s9 = inlined_call_operand.vmem [shape: bf16[288,128], index: 9, kind: input, shape index: {}]   ;;  %s2200_s10 = inlined_call_operand.vmem [shape: f32[1,128], index: 10, kind: input, shape index: {}]   ;;  %s2201_s11 = inlined_call_operand.vmem [shape: bf16[128,16], index: 11, kind: input, shape index: {}]   ;;  %s2202_s12 = inlined_call_operand.vmem [shape: f32[1,16], index: 12, kind: input, shape index: {}]   ;;  %s2203_s13 = inlined_call_operand.vmem [shape: f32[2,8], index: 13, kind: input, shape index: {}]   ;;  %s2204_s14 = inlined_call_operand.hbm [shape: f32[2,8], index: 14, kind: output, shape index: {0}]   ;;  %s2205_s15 = inlined_call_operand.hbm [shape: f32[1,1], index: 15, kind: output, shape index: {1}]  }
   0x1   :  { %v52_v0 = vld [vmem:[%s2190_s0] sm:$0xff]  ;;  %v53_v1 = vld [vmem:[%s2190_s0 + $0x8] sm:$0xff] }
   0x2   :  { %v1555_v2 = vld [vmem:[%s2191_s1 + $0x28] sm:$0xff]  ;;  %v1641_v3 = vpack.i.bf16 %v53_v1, %v52_v0  ;;  %v63_v4 = vrot.slane %v52_v0, 2  ;;  %v64_v5 = vrot.slane %v53_v1, 2  ;;  %v1554_v6 = vld [vmem:[%s2191_s1 + $0x20] sm:$0xff] }
   0x3   :  { %135 = vmatpush.bf16.msra.mxu0 %v1555_v2  ;;  %155 = vmatpush.bf16.msra.mxu1 %v1555_v2 }
   0x4   :  { %1642 = vrot.lane.b32.xlu0 %v1641_v3, %s1734_s26  ;;  %v65_v7 = vsel %vm62_vm0, %v63_v4, %v64_v5 }
   0x5   :  { %22 = vsyncpa [#allocation5], 0  ;;  %v1553_v8 = vld [vmem:[%s2191_s1 + $0x18] sm:$0xff]  ;;  %v1646_v9 = vpack.i.bf16 %v64_v5, %v65_v7  ;;  %v1552_v10 = vld [vmem:[%s2191_s1 + $0x10] sm:$0xff]  ;;  %v89_v13 = vpack.c.bf16 %v53_v1, %v52_v0  ;;  %vm129_vm1 = vcmask 785408   ;;  %vm73_vm2 = vcmask 523264  }
   0x6   :  { %v1551_v11 = vld [vmem:[%s2191_s1 + $0x8] sm:$0xff]  ;;  %v1550_v12 = vld [vmem:[%s2191_s1] sm:$0xff]  ;;  %v1579_v23 = vld [vmem:[%s2193_s3 + $0xb8] sm:$0xff]  ;;  %s1735_s23 = smov 8   ;;  %vm177_vm3 = vcmask 64512   ;;  %vm180_vm4 = vcmask 982016  }
   0x7   :  { %136 = vmatpush.bf16.msra.mxu0 %v1554_v6  ;;  %156 = vmatpush.bf16.msra.mxu1 %v1554_v6  ;;  %v1563_v24 = vld [vmem:[%s2193_s3 + $0x38] sm:$0xff]  ;;  %v1578_v26 = vld [vmem:[%s2193_s3 + $0xb0] sm:$0xff]  ;;  %v1577_v29 = vld [vmem:[%s2193_s3 + $0xa8] sm:$0xff]  ;;  %vm197_vm5 = vcmask 1041408   ;;  %vm1736_vm8 = vmmov 1   ;;  %vm445_vm10 = vcmask 916480  }
   0x8   :  { %v1571_v25 = vld [vmem:[%s2193_s3 + $0x78] sm:$0xff]  ;;  %403 = vmatpush.bf16.msra.mxu2 %v1563_v24  ;;  %v1562_v27 = vld [vmem:[%s2193_s3 + $0x30] sm:$0xff]  ;;  %v1561_v30 = vld [vmem:[%s2193_s3 + $0x28] sm:$0xff]  ;;  %vm447_vm11 = vcmask 914432   ;;  %s1738_s20 = smov 112   ;;  %s1739_s21 = smov 32  }
   0x9   :  { %417 = vmatpush.bf16.msra.mxu3 %v1571_v25  ;;  %v1570_v28 = vld [vmem:[%s2193_s3 + $0x70] sm:$0xff]  ;;  %v1569_v31 = vld [vmem:[%s2193_s3 + $0x68] sm:$0xff]  ;;  %v1576_v34 = vld [vmem:[%s2193_s3 + $0xa0] sm:$0xff]  ;;  %s1740_s22 = smov 96   ;;  %s1741_s24 = smov 48   ;;  %vm501_vm12 = vcmask 130048  }
   0xa   :  { %v1560_v35 = vld [vmem:[%s2193_s3 + $0x20] sm:$0xff]  ;;  %v1575_v38 = vld [vmem:[%s2193_s3 + $0x98] sm:$0xff]  ;;  %v1574_v44 = vld [vmem:[%s2193_s3 + $0x90] sm:$0xff]  ;;  %s1742_s25 = smov 16   ;;  %vm72_vm13 = vcmask 261120   ;;  %vm504_vm14 = vcmask 392192  }
   0xb   :  { %137 = vmatpush.bf16.msra.mxu0 %v1553_v8  ;;  %157 = vmatpush.bf16.msra.mxu1 %v1553_v8  ;;  %v1568_v36 = vld [vmem:[%s2193_s3 + $0x60] sm:$0xff]  ;;  %v1559_v39 = vld [vmem:[%s2193_s3 + $0x18] sm:$0xff]  ;;  %v1558_v45 = vld [vmem:[%s2193_s3 + $0x10] sm:$0xff]  ;;  %vm507_vm15 = vcmask 654336   ;;  %s1202_s29 = sshll.u32 %s2204_s14, 4  ;;  %s1745_s30 = smov [#allocation4]   ;;  %s1203_s29 = int_to_ptr.hbm [resolvable:$true] %s1202_s29 }
   0xc   :  { %1647 = vrot.lane.b32.xlu0 %v1646_v9, %s1734_s26  ;;  %404 = vmatpush.bf16.msra.mxu2 %v1562_v27  ;;  %v1671_v37 = vld [vmem:[%s2192_s2] ss:$0 sm:$0xff]  ;;  %v1567_v40 = vld [vmem:[%s2193_s3 + $0x58] sm:$0xff]  ;;  %v1573_v52 = vld [vmem:[%s2193_s3 + $0x88] sm:$0xff]  ;;  %s1211_s16 = sshll.u32 %s1745_s30, 4  ;;  %s1212_s16 = int_to_ptr.vmem [resolvable:$true] %s1211_s16 }
   0xd   :  { %418 = vmatpush.bf16.msra.mxu3 %v1570_v28  ;;  %v1557_v56 = vld [vmem:[%s2193_s3 + $0x8] sm:$0xff]  ;;  %v1566_v57 = vld [vmem:[%s2193_s3 + $0x50] sm:$0xff]  ;;  %v1572_v58 = vld [vmem:[%s2193_s3 + $0x80] sm:$0xff] }
   0xe   :  { %v1556_v59 = vld [vmem:[%s2193_s3] sm:$0xff]  ;;  %v1565_v60 = vld [vmem:[%s2193_s3 + $0x48] sm:$0xff]  ;;  %vm1935_vm6 = vmpackc.low %vm180_vm4, %vm180_vm4 }
   0xf   :  { %138 = vmatpush.bf16.msra.mxu0 %v1552_v10  ;;  %158 = vmatpush.bf16.msra.mxu1 %v1552_v10  ;;  %v1564_v61 = vld [vmem:[%s2193_s3 + $0x40] sm:$0xff]  ;;  %vm1349_vm7 = vmneg %vm197_vm5 }
  0x10   :  { %405 = vmatpush.bf16.msra.mxu2 %v1561_v30  ;;  %vm1350_vm9 = vmpackc.low %vm1736_vm8, %vm1349_vm7 }
  0x11   :  { %419 = vmatpush.bf16.msra.mxu3 %v1569_v31 }
  0x13   :  { %139 = vmatpush.bf16.msra.mxu0 %v1551_v11  ;;  %159 = vmatpush.bf16.msra.mxu1 %v1551_v11 }
  0x14   :  { %406 = vmatpush.bf16.msra.mxu2 %v1560_v35 }
  0x15   :  { %420 = vmatpush.bf16.msra.mxu3 %v1568_v36 }
  0x17   :  { %140 = vmatpush.bf16.msra.mxu0 %v1550_v12  ;;  %160 = vmatpush.bf16.msra.mxu1 %v1550_v12 }
  0x18   :  { %407 = vmatpush.bf16.msra.mxu2 %v1559_v39 }
  0x19   :  { %421 = vmatpush.bf16.msra.mxu3 %v1567_v40 }
  0x1a   :  { %1251 = vmatmul.msk.bf16.vlgmr.msra.gmra.mxu0 %vm129_vm1, %v89_v13 }
  0x1b   :  { %431 = vmatpush.bf16.msrb.mxu0 %v1579_v23 }
  0x1c   :  { %408 = vmatpush.bf16.msra.mxu2 %v1558_v45 }
  0x1d   :  { %422 = vmatpush.bf16.msra.mxu3 %v1566_v57 }
  0x1f   :  { %432 = vmatpush.bf16.msrb.mxu0 %v1578_v26 }
  0x20   :  { %409 = vmatpush.bf16.msra.mxu2 %v1557_v56 }
  0x21   :  { %423 = vmatpush.bf16.msra.mxu3 %v1565_v60 }
  0x23   :  { %433 = vmatpush.bf16.msrb.mxu0 %v1577_v29 }
  0x24   :  { %410 = vmatpush.bf16.msra.mxu2 %v1556_v59 }
  0x25   :  { %424 = vmatpush.bf16.msra.mxu3 %v1564_v61 }
  0x27   :  { %434 = vmatpush.bf16.msrb.mxu0 %v1576_v34 }
  0x2b   :  { %435 = vmatpush.bf16.msrb.mxu0 %v1575_v38 }
  0x2f   :  { %436 = vmatpush.bf16.msrb.mxu0 %v1574_v44 }
  0x33   :  { %437 = vmatpush.bf16.msrb.mxu0 %v1573_v52 }
  0x37   :  { %438 = vmatpush.bf16.msrb.mxu0 %v1572_v58 }
  0x76   :  { %v1643_v14 = vpop.permute.xlu0 %1642 }
  0x77   :  { %v1645_v16 = vunpack.i.h.bf16 %v1643_v14  ;;  %v1644_v17 = vunpack.i.l.bf16 %v1643_v14 }
  0x7e   :  { %v1648_v15 = vpop.permute.xlu0 %1647 }
  0x7f   :  { %v1650_v18 = vunpack.i.h.bf16 %v1648_v15  ;;  %v1649_v19 = vunpack.i.l.bf16 %v1648_v15 }
  0x81   :  { %v74_v20 = vsel %vm73_vm2, %v1644_v17, %v1649_v19  ;;  %v75_v21 = vsel %vm73_vm2, %v1645_v16, %v1650_v18  ;;  %v1672_v18 = vld [vmem:[%s2194_s4] ss:$0 sm:$0xff]  ;;  %s1737_s4 = smov 80  }
  0x82   :  { %v149_v22 = vpack.c.bf16 %v75_v21, %v74_v20 }
  0x84   :  { %1252 = vmatmul.msk.bf16.vlgmr.msra.gmra.mxu1 %vm129_vm1, %v149_v22 }
  0x97   :  { %v142_v32 = vpop.f32.mrf.mxu0 }
  0x98   :  { %v143_v49 = vadd.f32 %v1671_v37, %v142_v32 }
  0x9a   :  { %v147_v53 = vmax.f32 %v143_v49, 0.0 }
  0x9f   :  { %v144_v46 = vpop.f32.mrf.mxu0 }
  0xa0   :  { %v145_v50 = vadd.f32 %v1671_v37, %v144_v46 }
  0xa2   :  { %v148_v54 = vmax.f32 %v145_v50, 0.0 }
  0xa4   :  { %v1656_v55 = vpack.i.bf16 %v148_v54, %v147_v53 }
 0x101   :  { %v162_v33 = vpop.f32.mrf.mxu1 }
 0x102   :  { %v163_v41 = vadd.f32 %v1671_v37, %v162_v33 }
 0x104   :  { %v167_v47 = vmax.f32 %v163_v41, 0.0 }
 0x109   :  { %v164_v42 = vpop.f32.mrf.mxu1 }
 0x10a   :  { %v165_v43 = vadd.f32 %v1671_v37, %v164_v42 }
 0x10c   :  { %v168_v48 = vmax.f32 %v165_v43, 0.0 }
 0x10e   :  { %v1651_v51 = vpack.i.bf16 %v168_v48, %v167_v47 }
 0x110   :  { %1652 = vrot.lane.b32.xlu1 %v1651_v51, %s1735_s23 }
 0x118   :  { %1657 = vrot.lane.b32.xlu1 %v1656_v55, %s1735_s23 }
 0x182   :  { %v1653_v62 = vpop.permute.xlu1 %1652 }
 0x183   :  { %v1655_v63 = vunpack.i.h.bf16 %v1653_v62  ;;  %v1654_v0 = vunpack.i.l.bf16 %v1653_v62 }
 0x185   :  { %v192_v1 = vsel %vm177_vm3, 0.0, %v1655_v63  ;;  %v191_v2 = vsel %vm177_vm3, 0.0, %v1654_v0 }
 0x186   :  { %v194_v4 = vsel %vm180_vm4, %v192_v1, 0.0  ;;  %v193_v5 = vsel %vm180_vm4, %v191_v2, 0.0  ;;  %v1357_v6 = vpack.c.bf16 %v192_v1, %v191_v2 }
 0x187   :  { %v199_v7 = vrot.slane %v194_v4, 6  ;;  %v198_v8 = vrot.slane %v193_v5, 6 }
 0x188   :  { %1358 = vmatmul.msk.bf16.vlgmr.msrb.gmra.mxu0 %vm1935_vm6, %v1357_v6 }
 0x189   :  { %v200_v9 = vsel %vm197_vm5, %v198_v8, %v199_v7 }
 0x18a   :  { %v1658_v10 = vpop.permute.xlu1 %1657  ;;  %v1351_v11 = vpack.c.bf16 %v200_v9, %v198_v8 }
 0x18b   :  { %v1660_v12 = vunpack.i.h.bf16 %v1658_v10  ;;  %v1659_v13 = vunpack.i.l.bf16 %v1658_v10 }
 0x18c   :  { %1352 = vmatmul.msk.bf16.vlgmr.msra.gmra.mxu2 %vm1350_vm9, %v1351_v11 }
 0x18d   :  { %v179_v14 = vsel %vm177_vm3, 0.0, %v1660_v12  ;;  %v178_v15 = vsel %vm177_vm3, 0.0, %v1659_v13 }
 0x18e   :  { %v1354_v16 = vpack.c.bf16 %v179_v14, %v178_v15 }
 0x190   :  { %1355 = vmatmul.msk.bf16.vlgmr.msra.gmra.mxu3 %vm1935_vm6, %v1354_v16  ;;  %vm645_vm6 = vcmask 1043456  }
 0x205   :  { %v440_v19 = vpop.f32.mrf.mxu0 }
 0x20d   :  { %v442_v28 = vpop.f32.mrf.mxu0 }
 0x20f   :  { %v412_v17 = vpop.f32.mrf.mxu2 }
 0x210   :  { %v413_v21 = vadd.f32 %v1672_v18, %v412_v17 }
 0x213   :  { %v426_v20 = vpop.f32.mrf.mxu3 }
 0x214   :  { %v427_v23 = vadd.f32 %v426_v20, %v413_v21 }
 0x216   :  { %v1950_v26 = vadd.f32 %v440_v19, %v427_v23 }
 0x217   :  { %v414_v22 = vpop.f32.mrf.mxu2 }
 0x218   :  { %v415_v24 = vadd.f32 %v1672_v18, %v414_v22  ;;  %v446_v30 = vsel %vm445_vm10, %v1950_v26, 0.0 }
 0x21b   :  { %v428_v25 = vpop.f32.mrf.mxu3 }
 0x21c   :  { %v429_v27 = vadd.f32 %v428_v25, %v415_v24 }
 0x21e   :  { %v443_v29 = vadd.f32 %v442_v28, %v429_v27 }
 0x220   :  { %v448_v31 = vsel %vm447_vm11, %v443_v29, 0.0 }
 0x221   :  { %v449_v32 = vadd.f32 %v448_v31, %v446_v30 }
 0x223   :  { %v450_v33 = vrot.slane %v449_v32, 4 }
 0x225   :  { %v451_v34 = vadd.f32 %v450_v33, %v449_v32 }
 0x227   :  { %v452_v35 = vrot.slane %v451_v34, 2 }
 0x229   :  { %v453_v36 = vadd.f32 %v452_v35, %v451_v34  ;;  %v1600_v35 = vld [vmem:[%s2197_s7 + $0xa0] sm:$0xff] }
 0x22a   :  { %856 = vmatpush.bf16.msrb.mxu3 %v1600_v35 }
 0x22b   :  { %v454_v37 = vrot.slane %v453_v36, 1 }
 0x22d   :  { %v455_v38 = vadd.f32 %v454_v37, %v453_v36  ;;  %v1599_v36 = vld [vmem:[%s2197_s7 + $0x98] sm:$0xff] }
 0x22e   :  { %857 = vmatpush.bf16.msrb.mxu3 %v1599_v36 }
 0x22f   :  { %469 = vrot.lane.b32.xlu1 %v455_v38, %s1734_s26  ;;  %465 = vrot.lane.b32.xlu0 %v455_v38, %s1737_s4 }
 0x230   :  { %457 = vrot.lane.b32.xlu2 %v455_v38, %s1738_s20 }
 0x237   :  { %477 = vrot.lane.b32.xlu0 %v455_v38, %s1739_s21 }
 0x238   :  { %461 = vrot.lane.b32.xlu2 %v455_v38, %s1740_s22 }
 0x240   :  { %473 = vrot.lane.b32.xlu2 %v455_v38, %s1741_s24 }
 0x28a   :  { %v458_v39 = vpop.permute.xlu2 %457 }
 0x28b   :  { %v460_v41 = vadd.f32 %v458_v39, %v455_v38 }
 0x292   :  { %v462_v40 = vpop.permute.xlu2 %461 }
 0x293   :  { %v464_v42 = vadd.f32 %v462_v40, %v460_v41  ;;  %v1598_v40 = vld [vmem:[%s2197_s7 + $0x90] sm:$0xff] }
 0x294   :  { %858 = vmatpush.bf16.msrb.mxu3 %v1598_v40 }
 0x29a   :  { %v474_v47 = vpop.permute.xlu2 %473 }
 0x2a1   :  { %v466_v43 = vpop.permute.xlu0 %465  ;;  %v470_v45 = vpop.permute.xlu1 %469 }
 0x2a2   :  { %v468_v44 = vadd.f32 %v466_v43, %v464_v42 }
 0x2a4   :  { %v472_v46 = vadd.f32 %v470_v45, %v468_v44 }
 0x2a6   :  { %v476_v48 = vadd.f32 %v474_v47, %v472_v46 }
 0x2a9   :  { %v478_v49 = vpop.permute.xlu0 %477 }
 0x2aa   :  { %v480_v50 = vadd.f32 %v478_v49, %v476_v48 }
 0x2ac   :  { %v481_v51 = vmul.f32 0.010204081, %v480_v50  ;;  %v1673_v50 = vld [vmem:[%s2195_s5] ss:$0 sm:$0xff] }
 0x2ae   :  { %489 = vrot.lane.b32.xlu0 %v481_v51, %s1741_s24  ;;  %486 = vrot.lane.b32.xlu2 %v481_v51, %s1739_s21 }
 0x2af   :  { %483 = vrot.lane.b32.xlu1 %v481_v51, %s1742_s25 }
 0x2b6   :  { %498 = vrot.lane.b32.xlu0 %v481_v51, %s1740_s22  ;;  %495 = vrot.lane.b32.xlu2 %v481_v51, %s1737_s4 }
 0x2b7   :  { %492 = vrot.lane.b32.xlu1 %v481_v51, %s1734_s26 }
 0x308   :  { %v487_v52 = vpop.permute.xlu2 %486 }
 0x310   :  { %v496_v59 = vpop.permute.xlu2 %495 }
 0x320   :  { %v490_v53 = vpop.permute.xlu0 %489 }
 0x321   :  { %v484_v54 = vpop.permute.xlu1 %483 }
 0x322   :  { %v502_v55 = vsel %vm501_vm12, %v481_v51, %v484_v54  ;;  %v1674_v54 = vld [vmem:[%s2196_s6] ss:$0 sm:$0xff] }
 0x323   :  { %v503_v56 = vsel %vm72_vm13, %v502_v55, %v487_v52 }
 0x324   :  { %v505_v57 = vsel %vm504_vm14, %v503_v56, %v490_v53 }
 0x328   :  { %v499_v61 = vpop.permute.xlu0 %498 }
 0x329   :  { %v493_v58 = vpop.permute.xlu1 %492 }
 0x32a   :  { %v506_v60 = vsel %vm73_vm2, %v505_v57, %v493_v58 }
 0x32b   :  { %v508_v62 = vsel %vm507_vm15, %v506_v60, %v496_v59 }
 0x32c   :  { %v509_v63 = vsel %vm129_vm1, %v508_v62, %v499_v61 }
 0x32d   :  { %v510_v0 = vperm.slane %v509_v63, 0 }
 0x32f   :  { %v1974_v1 = vsub.f32 %v1950_v26, %v510_v0  ;;  %v1976_v2 = vsub.f32 %v443_v29, %v510_v0 }
 0x331   :  { %v513_v3 = vmul.f32 %v1974_v1, %v1974_v1  ;;  %v514_v4 = vmul.f32 %v1976_v2, %v1976_v2 }
 0x333   :  { %v515_v5 = vsel %vm445_vm10, %v513_v3, 0.0  ;;  %v516_v6 = vsel %vm447_vm11, %v514_v4, 0.0 }
 0x334   :  { %v517_v7 = vadd.f32 %v516_v6, %v515_v5  ;;  %v1595_v5 = vld [vmem:[%s2197_s7 + $0x78] sm:$0xff]  ;;  %v1596_v6 = vld [vmem:[%s2197_s7 + $0x80] sm:$0xff] }
 0x335   :  { %840 = vmatpush.bf16.msrb.mxu2 %v1595_v5 }
 0x336   :  { %v518_v8 = vrot.slane %v517_v7, 4 }
 0x338   :  { %v519_v9 = vadd.f32 %v518_v8, %v517_v7  ;;  %v1586_v7 = vld [vmem:[%s2197_s7 + $0x30] sm:$0xff] }
 0x339   :  { %v1594_v8 = vld [vmem:[%s2197_s7 + $0x70] sm:$0xff] }
 0x33a   :  { %v520_v10 = vrot.slane %v519_v9, 2  ;;  %841 = vmatpush.bf16.msrb.mxu2 %v1594_v8 }
 0x33c   :  { %v521_v11 = vadd.f32 %v520_v10, %v519_v9  ;;  %v1585_v9 = vld [vmem:[%s2197_s7 + $0x28] sm:$0xff] }
 0x33d   :  { %v1593_v10 = vld [vmem:[%s2197_s7 + $0x68] sm:$0xff] }
 0x33e   :  { %v522_v12 = vrot.slane %v521_v11, 1  ;;  %842 = vmatpush.bf16.msrb.mxu2 %v1593_v10 }
 0x340   :  { %v523_v13 = vadd.f32 %v522_v12, %v521_v11  ;;  %v1584_v11 = vld [vmem:[%s2197_s7 + $0x20] sm:$0xff] }
 0x341   :  { %v1592_v12 = vld [vmem:[%s2197_s7 + $0x60] sm:$0xff] }
 0x342   :  { %533 = vrot.lane.b32.xlu0 %v523_v13, %s1737_s4  ;;  %529 = vrot.lane.b32.xlu2 %v523_v13, %s1740_s22 }
 0x343   :  { %525 = vrot.lane.b32.xlu1 %v523_v13, %s1738_s20  ;;  %843 = vmatpush.bf16.msrb.mxu2 %v1592_v12  ;;  %v1601_v12 = vld [vmem:[%s2199_s9] sm:$0xff] }
 0x34a   :  { %545 = vrot.lane.b32.xlu0 %v523_v13, %s1739_s21  ;;  %541 = vrot.lane.b32.xlu2 %v523_v13, %s1741_s24 }
 0x34b   :  { %537 = vrot.lane.b32.xlu1 %v523_v13, %s1734_s26 }
 0x39c   :  { %v530_v14 = vpop.permute.xlu2 %529 }
 0x3a4   :  { %v542_v22 = vpop.permute.xlu2 %541 }
 0x3b4   :  { %v534_v17 = vpop.permute.xlu0 %533 }
 0x3b5   :  { %v526_v15 = vpop.permute.xlu1 %525 }
 0x3b6   :  { %v528_v16 = vadd.f32 %v526_v15, %v523_v13  ;;  %v1583_v13 = vld [vmem:[%s2197_s7 + $0x18] sm:$0xff]  ;;  %v1582_v15 = vld [vmem:[%s2197_s7 + $0x10] sm:$0xff] }
 0x3b8   :  { %v532_v18 = vadd.f32 %v530_v14, %v528_v16  ;;  %v1591_v14 = vld [vmem:[%s2197_s7 + $0x58] sm:$0xff]  ;;  %v1590_v16 = vld [vmem:[%s2197_s7 + $0x50] sm:$0xff] }
 0x3b9   :  { %844 = vmatpush.bf16.msrb.mxu2 %v1591_v14  ;;  %v1626_v14 = vld [vmem:[%s2201_s11 + $0x38] sm:$0xff] }
 0x3ba   :  { %v536_v19 = vadd.f32 %v534_v17, %v532_v18  ;;  %v1581_v17 = vld [vmem:[%s2197_s7 + $0x8] sm:$0xff] }
 0x3bb   :  { %v1589_v18 = vld [vmem:[%s2197_s7 + $0x48] sm:$0xff] }
 0x3bc   :  { %v546_v24 = vpop.permute.xlu0 %545 }
 0x3bd   :  { %v538_v20 = vpop.permute.xlu1 %537  ;;  %845 = vmatpush.bf16.msrb.mxu2 %v1590_v16  ;;  %v1624_v16 = vld [vmem:[%s2201_s11 + $0x28] sm:$0xff] }
 0x3be   :  { %v540_v21 = vadd.f32 %v538_v20, %v536_v19  ;;  %v1580_v19 = vld [vmem:[%s2197_s7] sm:$0xff] }
 0x3bf   :  { %v1588_v20 = vld [vmem:[%s2197_s7 + $0x40] sm:$0xff] }
 0x3c0   :  { %v544_v23 = vadd.f32 %v542_v22, %v540_v21 }
 0x3c1   :  { %846 = vmatpush.bf16.msrb.mxu2 %v1589_v18 }
 0x3c2   :  { %v548_v25 = vadd.f32 %v546_v24, %v544_v23 }
 0x3c4   :  { %v549_v26 = vmul.f32 0.010204081, %v548_v25 }
 0x3c5   :  { %847 = vmatpush.bf16.msrb.mxu2 %v1588_v20 }
 0x3c6   :  { %v550_v27 = vadd.f32 1e-05, %v549_v26 }
 0x3c8   :  { %1678 = vrsqrt.f32 %v550_v27  ;;  %vm557_vm3 = vweird.f32 %v550_v27 }
 0x3c9   :  { %1141 = vmatpush.bf16.msra.mxu2 %v1626_v14 }
 0x3ce   :  { %v1679_v28 = vpop.eup %1678 }
 0x3cf   :  { %v552_v29 = vmul.f32 %v1679_v28, %v550_v27  ;;  %vm558_vm0 = vweird.f32 %v1679_v28 }
 0x3d0   :  { %vm559_vm4 = vmor %vm557_vm3, %vm558_vm0 }
 0x3d1   :  { %v553_v30 = vmul.f32 %v1679_v28, %v552_v29 }
 0x3d3   :  { %v554_v31 = vmul.f32 0.5, %v553_v30 }
 0x3d5   :  { %v555_v32 = vsub.f32 1.5, %v554_v31 }
 0x3d7   :  { %v556_v33 = vmul.f32 %v1679_v28, %v555_v32 }
 0x3d9   :  { %v560_v34 = vsel %vm559_vm4, %v1679_v28, %v556_v33 }
 0x3da   :  { %568 = vrot.lane.b32.xlu0 %v560_v34, %s1741_s24  ;;  %565 = vrot.lane.b32.xlu2 %v560_v34, %s1739_s21 }
 0x3db   :  { %562 = vrot.lane.b32.xlu1 %v560_v34, %s1742_s25 }
 0x3e2   :  { %577 = vrot.lane.b32.xlu0 %v560_v34, %s1740_s22  ;;  %574 = vrot.lane.b32.xlu2 %v560_v34, %s1737_s4 }
 0x3e3   :  { %571 = vrot.lane.b32.xlu1 %v560_v34, %s1734_s26 }
 0x434   :  { %v566_v37 = vpop.permute.xlu2 %565 }
 0x43c   :  { %v575_v45 = vpop.permute.xlu2 %574 }
 0x44c   :  { %v569_v38 = vpop.permute.xlu0 %568 }
 0x44d   :  { %v563_v39 = vpop.permute.xlu1 %562 }
 0x44e   :  { %v580_v41 = vsel %vm501_vm12, %v560_v34, %v563_v39 }
 0x44f   :  { %v581_v42 = vsel %vm72_vm13, %v580_v41, %v566_v37 }
 0x450   :  { %v582_v43 = vsel %vm504_vm14, %v581_v42, %v569_v38 }
 0x454   :  { %v578_v47 = vpop.permute.xlu0 %577 }
 0x455   :  { %v572_v44 = vpop.permute.xlu1 %571 }
 0x456   :  { %v583_v46 = vsel %vm73_vm2, %v582_v43, %v572_v44 }
 0x457   :  { %v584_v48 = vsel %vm507_vm15, %v583_v46, %v575_v45 }
 0x458   :  { %v585_v49 = vsel %vm129_vm1, %v584_v48, %v578_v47  ;;  %v1608_v48 = vld [vmem:[%s2199_s9 + $0x38] sm:$0xff] }
 0x459   :  { %v586_v51 = vperm.slane %v585_v49, 0  ;;  %v1616_v49 = vld [vmem:[%s2199_s9 + $0x78] sm:$0xff] }
 0x45a   :  { %1045 = vmatpush.bf16.msra.mxu0 %v1616_v49 }
 0x45b   :  { %v587_v52 = vmul.f32 %v586_v51, %v1974_v1  ;;  %v588_v53 = vmul.f32 %v586_v51, %v1976_v2  ;;  %v1597_v1 = vld [vmem:[%s2197_s7 + $0x88] sm:$0xff]  ;;  %v1587_v2 = vld [vmem:[%s2197_s7 + $0x38] sm:$0xff]  ;;  %v1615_v51 = vld [vmem:[%s2199_s9 + $0x70] sm:$0xff]  ;;  %s1213_s7 = sshll.u32 %s2205_s15, 4  ;;  %s1214_s7 = int_to_ptr.hbm [resolvable:$true] %s1213_s7 }
 0x45c   :  { %859 = vmatpush.bf16.msrb.mxu3 %v1597_v1  ;;  %827 = vmatpush.bf16.msrb.mxu1 %v1587_v2  ;;  %v1610_v1 = vld [vmem:[%s2199_s9 + $0x48] sm:$0xff] }
 0x45d   :  { %v593_v55 = vmul.f32 %v1673_v50, %v587_v52  ;;  %v594_v56 = vmul.f32 %v1673_v50, %v588_v53  ;;  %v1607_v50 = vld [vmem:[%s2199_s9 + $0x30] sm:$0xff]  ;;  %v1618_v52 = vld [vmem:[%s2199_s9 + $0x88] sm:$0xff] }
 0x45e   :  { %1046 = vmatpush.bf16.msra.mxu0 %v1615_v51 }
 0x45f   :  { %v599_v57 = vadd.f32 %v1674_v54, %v593_v55  ;;  %v600_v58 = vadd.f32 %v1674_v54, %v594_v56  ;;  %v1606_v54 = vld [vmem:[%s2199_s9 + $0x28] sm:$0xff]  ;;  %v1617_v56 = vld [vmem:[%s2199_s9 + $0x80] sm:$0xff] }
 0x460   :  { %860 = vmatpush.bf16.msrb.mxu3 %v1596_v6  ;;  %828 = vmatpush.bf16.msrb.mxu1 %v1586_v7  ;;  %v1614_v55 = vld [vmem:[%s2199_s9 + $0x68] sm:$0xff] }
 0x461   :  { %v601_v59 = vmax.f32 %v599_v57, 0.0  ;;  %v602_v60 = vmax.f32 %v600_v58, 0.0  ;;  %v1605_v57 = vld [vmem:[%s2199_s9 + $0x20] sm:$0xff] }
 0x462   :  { %1047 = vmatpush.bf16.msra.mxu0 %v1614_v55  ;;  %v1613_v58 = vld [vmem:[%s2199_s9 + $0x60] sm:$0xff] }
 0x463   :  { %v608_v61 = vrot.slane %v601_v59, 4  ;;  %v615_v62 = vrot.slane %v602_v60, 4  ;;  %v604_v63 = vrot.slane %v601_v59, 2  ;;  %v620_v0 = vrot.slane %v602_v60, 2 }
 0x464   :  { %829 = vmatpush.bf16.msrb.mxu1 %v1585_v9  ;;  %1032 = vmatpush.bf16.msra.mxu3 %v1608_v48 }
 0x465   :  { %v1666_v3 = vpack.i.bf16 %v608_v61, %v615_v62  ;;  %v1661_v4 = vpack.i.bf16 %v620_v0, %v604_v63  ;;  %v1675_v62 = vld [vmem:[%s2198_s8] ss:$0 sm:$0xff]  ;;  %v1603_v63 = vld [vmem:[%s2199_s9 + $0x10] sm:$0xff] }
 0x466   :  { %1048 = vmatpush.bf16.msra.mxu0 %v1613_v58  ;;  %v1611_v0 = vld [vmem:[%s2199_s9 + $0x50] sm:$0xff] }
 0x467   :  { %1667 = vrot.lane.b32.xlu2 %v1666_v3, %s1740_s22  ;;  %1662 = vrot.lane.b32.xlu1 %v1661_v4, %s1738_s20  ;;  %v1602_v4 = vld [vmem:[%s2199_s9 + $0x8] sm:$0xff] }
 0x468   :  { %830 = vmatpush.bf16.msrb.mxu1 %v1584_v11  ;;  %1033 = vmatpush.bf16.msra.mxu3 %v1607_v50 }
 0x46c   :  { %831 = vmatpush.bf16.msrb.mxu1 %v1583_v13  ;;  %1034 = vmatpush.bf16.msra.mxu3 %v1606_v54  ;;  %v1609_v13 = vld [vmem:[%s2199_s9 + $0x40] sm:$0xff] }
 0x470   :  { %832 = vmatpush.bf16.msrb.mxu1 %v1582_v15  ;;  %1035 = vmatpush.bf16.msra.mxu3 %v1605_v57  ;;  %v1625_v15 = vld [vmem:[%s2201_s11 + $0x30] sm:$0xff] }
 0x471   :  { %1142 = vmatpush.bf16.msra.mxu2 %v1625_v15 }
 0x474   :  { %833 = vmatpush.bf16.msrb.mxu1 %v1581_v17  ;;  %v1623_v17 = vld [vmem:[%s2201_s11 + $0x20] sm:$0xff] }
 0x475   :  { %1143 = vmatpush.bf16.msra.mxu2 %v1624_v16 }
 0x478   :  { %834 = vmatpush.bf16.msrb.mxu1 %v1580_v19 }
 0x479   :  { %1144 = vmatpush.bf16.msra.mxu2 %v1623_v17 }
 0x47c   :  { %1064 = vmatpush.bf16.msra.mxu1 %v1618_v52 }
 0x480   :  { %1065 = vmatpush.bf16.msra.mxu1 %v1617_v56 }
 0x4c1   :  { %v1668_v21 = vpop.permute.xlu2 %1667 }
 0x4c2   :  { %v1669_v22 = vunpack.i.l.bf16 %v1668_v21  ;;  %v1670_v23 = vunpack.i.h.bf16 %v1668_v21 }
 0x4c4   :  { %v630_v24 = vrot.slane %v1669_v22, 2  ;;  %v638_v25 = vrot.slane %v1669_v22, 4 }
 0x4c6   :  { %v644_v26 = vsel %vm197_vm5, %v1670_v23, %v630_v24 }
 0x4c7   :  { %v648_v27 = vsel %vm645_vm6, %v644_v26, %v638_v25  ;;  %v1622_v25 = vld [vmem:[%s2201_s11 + $0x18] sm:$0xff]  ;;  %v1621_v26 = vld [vmem:[%s2201_s11 + $0x10] sm:$0xff] }
 0x4c8   :  { %v651_v28 = vpack.c.bf16 %v648_v27, %v648_v27  ;;  %1145 = vmatpush.bf16.msra.mxu2 %v1622_v25  ;;  %v1620_v27 = vld [vmem:[%s2201_s11 + $0x8] sm:$0xff] }
 0x4ca   :  { %1443 = vmatmul.msk.bf16.vlgmr.msrb.gmra.mxu3 %vm507_vm15, %v651_v28  ;;  %v1619_v28 = vld [vmem:[%s2201_s11] sm:$0xff] }
 0x4cc   :  { %1146 = vmatpush.bf16.msra.mxu2 %v1621_v26 }
 0x4d0   :  { %1147 = vmatpush.bf16.msra.mxu2 %v1620_v27 }
 0x4d4   :  { %1148 = vmatpush.bf16.msra.mxu2 %v1619_v28 }
 0x4d9   :  { %v1663_v29 = vpop.permute.xlu1 %1662 }
 0x4da   :  { %v1665_v30 = vunpack.i.h.bf16 %v1663_v29  ;;  %v1664_v31 = vunpack.i.l.bf16 %v1663_v29 }
 0x4dc   :  { %v624_v32 = vsel %vm445_vm10, %v602_v60, %v1665_v30  ;;  %v625_v33 = vsel %vm129_vm1, %v1665_v30, %v1669_v22  ;;  %v612_v34 = vsel %vm445_vm10, %v601_v59, %v1664_v31  ;;  %v619_v37 = vsel %vm129_vm1, %v1664_v31, %v1669_v22  ;;  %v1604_v59 = vld [vmem:[%s2199_s9 + $0x18] sm:$0xff] }
 0x4dd   :  { %v636_v35 = vrot.slane %v624_v32, 4  ;;  %v637_v36 = vrot.slane %v625_v33, 4  ;;  %v628_v38 = vrot.slane %v612_v34, 2  ;;  %v629_v39 = vrot.slane %v619_v37, 2  ;;  %v1612_v60 = vld [vmem:[%s2199_s9 + $0x58] sm:$0xff]  ;;  %1036 = vmatpush.bf16.msra.mxu3 %v1604_v59 }
 0x4de   :  { %v613_v40 = vsel %vm129_vm1, %v1664_v31, %v1670_v23  ;;  %1049 = vmatpush.bf16.msra.mxu0 %v1612_v60  ;;  %v1676_v31 = vld [vmem:[%s2200_s10] ss:$0 sm:$0xff] }
 0x4df   :  { %v642_v41 = vsel %vm197_vm5, %v612_v34, %v628_v38  ;;  %v643_v43 = vsel %vm197_vm5, %v613_v40, %v629_v39 }
 0x4e0   :  { %v646_v42 = vsel %vm645_vm6, %v642_v41, %v636_v35  ;;  %v647_v45 = vsel %vm645_vm6, %v643_v43, %v637_v36  ;;  %v1677_v41 = vld [vmem:[%s2202_s12] ss:$0 sm:$0xff]  ;;  %s1743_s12 = smov 120  }
 0x4e1   :  { %v649_v44 = vpack.c.bf16 %v646_v42, %v646_v42  ;;  %v650_v46 = vpack.c.bf16 %v647_v45, %v647_v45  ;;  %1037 = vmatpush.bf16.msra.mxu3 %v1603_v63 }
 0x4e2   :  { %1050 = vmatpush.bf16.msra.mxu0 %v1611_v0 }
 0x4e3   :  { %835 = vmatmul.bf16.vlgmr.msrb.gmra.mxu1 %v649_v44  ;;  %848 = vmatmul.bf16.vlgmr.msrb.gmra.mxu2 %v650_v46  ;;  %v1156_v46 = vld [vmem:[%s2203_s13] sm:$0x3]  ;;  %s1744_s13 = smov [#allocation2]  }
 0x4e5   :  { %1038 = vmatpush.bf16.msra.mxu3 %v1602_v4 }
 0x4e6   :  { %1051 = vmatpush.bf16.msra.mxu0 %v1610_v1 }
 0x4e9   :  { %1039 = vmatpush.bf16.msra.mxu3 %v1601_v12 }
 0x4ea   :  { %1052 = vmatpush.bf16.msra.mxu0 %v1609_v13 }
 0x54d   :  { %v862_v47 = vpop.f32.mrf.mxu3 }
 0x555   :  { %v864_v53 = vpop.f32.mrf.mxu3 }
 0x560   :  { %v836_v61 = vpop.f32.mrf.mxu1 }
 0x561   :  { %v837_v3 = vadd.f32 %v1675_v62, %v836_v61 }
 0x566   :  { %v849_v2 = vpop.f32.mrf.mxu2 }
 0x567   :  { %v850_v5 = vadd.f32 %v849_v2, %v837_v3 }
 0x568   :  { %v838_v6 = vpop.f32.mrf.mxu1 }
 0x569   :  { %v863_v7 = vadd.f32 %v862_v47, %v850_v5 }
 0x56b   :  { %v866_v8 = vmax.f32 %v863_v7, 0.0 }
 0x56d   :  { %v872_v9 = vrot.slane %v866_v8, 4  ;;  %v868_v10 = vrot.slane %v866_v8, 2 }
 0x56e   :  { %v851_v11 = vpop.f32.mrf.mxu2 }
 0x56f   :  { %873 = vrot.lane.b32.xlu1 %v872_v9, %s1734_s26  ;;  %869 = vrot.lane.b32.xlu0 %v868_v10, %s1740_s22 }
 0x5e1   :  { %v874_v18 = vpop.permute.xlu1 %873  ;;  %v870_v19 = vpop.permute.xlu0 %869 }
 0x5e2   :  { %v880_v20 = vpack.c.bf16 %v874_v18, %v874_v18  ;;  %v876_v21 = vsel %vm129_vm1, %v866_v8, %v870_v19  ;;  %v877_v22 = vsel %vm73_vm2, %v870_v19, %v874_v18  ;;  %vm1167_vm1 = vcmask 58368  }
 0x5e3   :  { %v878_v23 = vpack.c.bf16 %v876_v21, %v876_v21  ;;  %v879_v24 = vpack.c.bf16 %v877_v22, %v877_v22  ;;  %vm1193_vm2 = vcmask 0  }
 0x5e4   :  { %1516 = vmatmul.msk.bf16.vlgmr.msra.gmra.mxu1 %vm72_vm13, %v880_v20 }
 0x5e5   :  { %1040 = vmatmul.bf16.vlgmr.msra.gmra.mxu3 %v878_v23  ;;  %1053 = vmatmul.bf16.vlgmr.msra.gmra.mxu0 %v879_v24 }
 0x661   :  { %v1067_v29 = vpop.f32.mrf.mxu1 }
 0x662   :  { %v1054_v30 = vpop.f32.mrf.mxu0 }
 0x668   :  { %v1041_v32 = vpop.f32.mrf.mxu3 }
 0x669   :  { %v1042_v33 = vadd.f32 %v1676_v31, %v1041_v32  ;;  %v1069_v34 = vpop.f32.mrf.mxu1 }
 0x66a   :  { %v1056_v35 = vpop.f32.mrf.mxu0 }
 0x66b   :  { %v1055_v36 = vadd.f32 %v1054_v30, %v1042_v33 }
 0x66d   :  { %v1068_v37 = vadd.f32 %v1067_v29, %v1055_v36 }
 0x66f   :  { %v1071_v38 = vmax.f32 %v1068_v37, 0.0 }
 0x670   :  { %v1043_v39 = vpop.f32.mrf.mxu3 }
 0x671   :  { %v1072_v40 = vpack.c.bf16 %v1071_v38, %v1071_v38 }
 0x673   :  { %1149 = vmatmul.bf16.vlgmr.msra.gmra.mxu2 %v1072_v40 }
 0x6f6   :  { %v1150_v42 = vpop.f32.mrf.mxu2 }
 0x6f7   :  { %v1151_v43 = vadd.f32 %v1677_v41, %v1150_v42 }
 0x6f9   :  { %v1170_v44 = vmul.f32 %v1151_v43, %v1151_v43  ;;  %v1154_v47 = vmul.f32 1.442695, %v1151_v43 }
 0x6fb   :  { %1172 = vrot.lane.b32.xlu2 %v1170_v44, %s1735_s23  ;;  %1680 = vpow2.f32 %v1154_v47 }
 0x6fe   :  { %v1152_v45 = vpop.f32.mrf.mxu2 }
 0x701   :  { %v1681_v48 = vpop.eup %1680 }
 0x702   :  { %v1169_v49 = vmul.f32 %v1681_v48, %v1681_v48 }
 0x703   :  { %1158 = vrot.lane.b32.xlu2 %v1156_v46, %s1735_s23  ;;  %s1200_s23 = sshll.u32 %s1744_s13, 4  ;;  %s1201_s23 = int_to_ptr.vmem [resolvable:$true] %s1200_s23 }
 0x755   :  { %v1173_v50 = vpop.permute.xlu2 %1172 }
 0x756   :  { %v1175_v51 = vadd.f32 %v1173_v50, %v1169_v49 }
 0x758   :  { %v1176_v52 = vsub.f32 %v1175_v51, %v1151_v43 }
 0x75a   :  { %v1549_v53 = vadd.f32 -0.5, %v1176_v52 }
 0x75c   :  { %1179 = vrot.lane.b32.xlu0 %v1549_v53, %s1743_s12 }
 0x75d   :  { %v1159_v54 = vpop.permute.xlu2 %1158 }
 0x75e   :  { %v1161_v55 = vmul.f32 %v1681_v48, %v1159_v54 }
 0x764   :  { %1163 = vrot.lane.b32.xlu0 %v1161_v55, %s1743_s12 }
 0x7ce   :  { %v1180_v56 = vpop.permute.xlu0 %1179 }
 0x7cf   :  { %v1182_v57 = vsel %vm1167_vm1, %v1180_v56, 0.0 }
 0x7d0   :  { %1183 = vadd.xlane.f32.xlu1 %v1182_v57 }
 0x7d6   :  { %v1164_v58 = vpop.permute.xlu0 %1163 }
 0x7d7   :  { %v1166_v59 = vadd.f32 %v1164_v58, %v1151_v43 }
 0x7d9   :  { %1168 = vst.msk [vmem:[#allocation2] sm:$0x3] %vm1167_vm1, %v1166_v59 }
 0x7da   :  { %1205 = dma.vmem_to_hbm [thread:$0]  %s1201_s23, 32, %s1203_s29, [#allocation3]  }
 0x843   :  { %v1184_v60 = vpop.xlane.xlu1 %1183 }
 0x844   :  { %v1185_v61 = vrot.slane %v1184_v60, 4 }
 0x846   :  { %v1186_v62 = vadd.f32 %v1185_v61, %v1184_v60 }
 0x848   :  { %v1187_v63 = vrot.slane %v1186_v62, 2 }
 0x84a   :  { %v1188_v0 = vadd.f32 %v1187_v63, %v1186_v62 }
 0x84c   :  { %v1189_v3 = vrot.slane %v1188_v0, 1 }
 0x84e   :  { %v1190_v4 = vadd.f32 %v1189_v3, %v1188_v0 }
 0x850   :  { %1627 = vpush %v1190_v4 }
 0x881   :  { %s1628_s14 = spop %1627 }
 0x882   :  { %v1192_v1 = vstv %s1628_s14 }
 0x883   :  { %1194 = vst.msk [vmem:[#allocation4] sm:$0x1] %vm1193_vm2, %v1192_v1 }
 0x884   :  { %1216 = dma.vmem_to_hbm [thread:$0]  %s1212_s16, 16, %s1214_s7, [#allocation5]  }
 0x885   :  { %1730 = dma.done.wait [#allocation3], 32  }
 0x886   :  { %1731 = vsyncadd [#allocation3], 4294967264 }
 0x887   :  { %1732 = dma.done.wait [#allocation5], 16  }
 0x888   :  { %1733 = vsyncadd [#allocation5], 4294967280 }
 0x889   :  { %1225 = vsyncpa [#allocation3], 1 }
 0x88a   :  { %1226 = vsyncpa [#allocation5], 1 }

</bundles_post_ra>
